<compile_context>
chip_gen: v7x
topology: tpu7x:2x2x1
jax: 0.10.0
libtpu: 0.0.40
codegen_flags: <defaults>
</compile_context>

<pallas_src>
import jax
import jax.numpy as jnp
from jax.experimental import pallas as pl
from jax.experimental.pallas import tpu as pltpu


# --------------------------------------------------------------------------
# Kernels
# --------------------------------------------------------------------------
def _build_kernel(n, d, o, emit_pairs):
    """Kernel factory.  Block shapes (per grid step (b, i)):

      xa_ref:         (1, TI, D+1)       row tile of [x | 1]  (the "i" rows)
      xflat_ref:      (1, 1, N*D)        x[b] flattened lane-dense (the "j" rows)
      jpair_ref:      (1, 1, N*O)        (x[b] @ Wp + bp) flattened lane-dense
      wcat_ref:       (D+1, W)           [tile(Wp,N) | tile(I_D,N)? | Ws ; 0|0|bs]
      single_ref:     (1, TI, O)
      pair_flat_ref:  (1, TI, N*O)       lane-dense pair_out tile
      pairs_flat_ref: (1, TI, N*D)       lane-dense pairs tile (only if emit_pairs)
    """
    no = n * o
    nd = n * d

    def kernel_pairs(xa_ref, xflat_ref, jpair_ref, wcat_ref,
                     single_ref, pair_flat_ref, pairs_flat_ref):
        xa = xa_ref[0]                                           # (TI, D+1)
        # One fused MXU pass; K = D+1 so the extra flops are negligible and
        # fully hidden under the HBM-write bound.  Slice offsets 0, N*O and
        # N*O+N*D are 128-lane aligned for the guarded shapes, so the slices
        # below are free views (no relayout on N^2-scale data).
        xw = jnp.dot(xa, wcat_ref[...], preferred_element_type=jnp.float32)
        i_pair = xw[:, :no].astype(jpair_ref.dtype)              # (TI, N*O)
        i_x = xw[:, no:no + nd].astype(xflat_ref.dtype)          # (TI, N*D)
        single = xw[:, no + nd:]                                 # (TI, O), bias folded

        single_ref[0] = single.astype(single_ref.dtype)
        # pair_out[i, j] = (x_j @ Wp + bp) - x_i @ Wp   (bp folded once, j-side)
        pair_flat_ref[0] = (jpair_ref[0] - i_pair).astype(pair_flat_ref.dtype)
        # pairs[i, j] = x_j - x_i
        pairs_flat_ref[0] = (xflat_ref[0] - i_x).astype(pairs_flat_ref.dtype)

    def kernel_nopairs(xa_ref, jpair_ref, wcat_ref, single_ref, pair_flat_ref):
        xa = xa_ref[0]
        xw = jnp.dot(xa, wcat_ref[...], preferred_element_type=jnp.float32)
        i_pair = xw[:, :no].astype(jpair_ref.dtype)
        single = xw[:, no:]
        single_ref[0] = single.astype(single_ref.dtype)
        pair_flat_ref[0] = (jpair_ref[0] - i_pair).astype(pair_flat_ref.dtype)

    return kernel_pairs if emit_pairs else kernel_nopairs


# --------------------------------------------------------------------------
# Chip-aware sizing helpers
# --------------------------------------------------------------------------
def _device_kind():
    try:
        return jax.devices()[0].device_kind.lower()
    except Exception:
        return ""


def _vmem_capacity_bytes():
    try:
        return int(pltpu.get_tpu_info().vmem_capacity_bytes)
    except Exception:
        # v7x has 64 MiB/TC; v5e/v6e have 128 MiB.
        return (64 << 20) if "v7" in _device_kind() else (128 << 20)


def _select_tile(batch, n, step_bytes_fn, budget_bytes, min_steps=8):
    """Largest row tile TI (TI % 8 == 0 and TI | N, or TI == N) whose per-step
    footprint fits `budget_bytes`, preferring tiles that keep the grid at
    >= min_steps steps (pipelining + dual-TC sharding)."""
    if n % 8 == 0:
        candidates = [t for t in range(8, n + 1, 8) if n % t == 0]
    else:
        candidates = [n]  # (8,128) rule: row tile must be 8-aligned or full N
    fitting = [t for t in candidates if step_bytes_fn(t) <= budget_bytes]
    if not fitting:
        return min(candidates)           # caller re-checks against the limit
    stepped = [t for t in fitting if batch * (n // t) >= min_steps]
    return max(stepped) if stepped else max(fitting)


# --------------------------------------------------------------------------
# Wrapper
# --------------------------------------------------------------------------
def make_features(x, ws, bs, wp, bp, *, row_tile=None):
    """x: (B, N, D); ws/wp: (D, O); bs/bp: (1, O). Returns (single, pair_out, pairs)."""
    B, N, D = x.shape
    O = ws.shape[1]
    out_dtype = x.dtype

    # Emit the pairs slab from the kernel only when it is lane-dense
    # (N*D a multiple of 128); otherwise the tiny broadcast subtract is left
    # to plain XLA so the kernel never does masked stores on N^2 data.
    emit_pairs = (N * D) % 128 == 0

    # ---- chip-aware VMEM sizing -------------------------------------------
    vmem_cap = _vmem_capacity_bytes()
    vmem_limit = max(min(int(0.75 * vmem_cap), vmem_cap - (16 << 20)), vmem_cap // 2)
    budget = vmem_limit // 4             # per-step footprint target

    # Narrow (output-dtype) subtract path on chips with a bf16 VPU.
    narrow = (jnp.dtype(out_dtype).itemsize == 2) and ("v5" not in _device_kind())
    jpair_dtype = out_dtype if narrow else jnp.float32

    w_dtype = jnp.result_type(ws.dtype, wp.dtype)
    w_total = N * O + (N * D if emit_pairs else 0) + O

    out_isz = jnp.dtype(out_dtype).itemsize
    in_isz = jnp.dtype(x.dtype).itemsize
    jp_isz = jnp.dtype(jpair_dtype).itemsize
    w_isz = jnp.dtype(w_dtype).itemsize

    def step_bytes(ti):
        b = 2 * ti * (N * O + O) * out_isz            # 2x-buffered pair_out + single
        if emit_pairs:
            b += 2 * ti * N * D * out_isz             # 2x-buffered pairs slab
        b += ti * w_total * 4                         # f32 fused-matmul result
        b += 2 * ti * (D + 1) * in_isz                # x row tile
        b += 2 * (D + 1) * w_total * w_isz            # fused weights (conservative 2x)
        b += 2 * N * O * jp_isz                       # j-side pair row
        if emit_pairs:
            b += 2 * N * D * in_isz                   # j-side x row
        return b

    TI = row_tile if row_tile is not None else _select_tile(B, N, step_bytes, budget)
    assert N % TI == 0 and (TI % 8 == 0 or TI == N), (N, TI)

    need = step_bytes(TI)
    if need > budget:
        if need + (8 << 20) <= int(0.9 * vmem_cap):
            vmem_limit = need + (8 << 20)             # raise limit with headroom
        else:
            # No legal tile fits this chip's VMEM; stay correct via plain XLA.
            return make_features_ref(x, ws, bs, wp, bp)

    # ---- wrapper-side layout plumbing (N-sized data only) -------------------
    # x augmented with a ones column so bs folds into the fused matmul (K=D+1).
    x_aug = jnp.concatenate([x, jnp.ones((B, N, 1), dtype=x.dtype)], axis=-1)
    # j-side rows, pre-flattened lane-dense; bp folded exactly once here.
    jpair = (jnp.dot(x, wp, preferred_element_type=jnp.float32) + bp[0]
             ).astype(jpair_dtype).reshape(B, 1, N * O)
    # Fused lane-replicated weight; segment order [Wp-tile | I_D-tile | Ws]
    # keeps every xw slice 128-lane aligned when N*O (and N*D) are 128-mults.
    top = [jnp.tile(wp.astype(w_dtype), (1, N))]
    bot = [jnp.zeros((1, N * O), w_dtype)]
    if emit_pairs:
        top.append(jnp.tile(jnp.eye(D, dtype=w_dtype), (1, N)))
        bot.append(jnp.zeros((1, N * D), w_dtype))
    top.append(ws.astype(w_dtype))
    bot.append(bs.astype(w_dtype))
    wcat = jnp.concatenate([jnp.concatenate(top, axis=1),
                            jnp.concatenate(bot, axis=1)], axis=0)   # (D+1, W)

    grid = (B, N // TI)   # b outermost => j-side rows re-DMA only B times

    in_specs = [pl.BlockSpec((1, TI, D + 1), lambda b, i: (b, i, 0))]
    args = [x_aug]
    if emit_pairs:
        xflat = x.reshape(B, 1, N * D)
        in_specs.append(pl.BlockSpec((1, 1, N * D), lambda b, i: (b, 0, 0)))
        args.append(xflat)
    in_specs.append(pl.BlockSpec((1, 1, N * O), lambda b, i: (b, 0, 0)))
    args.append(jpair)
    in_specs.append(pl.BlockSpec((D + 1, w_total), lambda b, i: (0, 0)))
    args.append(wcat)

    out_shape = [jax.ShapeDtypeStruct((B, N, O), out_dtype),          # single
                 jax.ShapeDtypeStruct((B, N, N * O), out_dtype)]      # pair_out slab
    out_specs = [pl.BlockSpec((1, TI, O), lambda b, i: (b, i, 0)),
                 pl.BlockSpec((1, TI, N * O), lambda b, i: (b, i, 0))]
    if emit_pairs:
        out_shape.append(jax.ShapeDtypeStruct((B, N, N * D), out_dtype))
        out_specs.append(pl.BlockSpec((1, TI, N * D), lambda b, i: (b, i, 0)))

    cost = pl.CostEstimate(
        flops=2 * B * N * (D + 1) * w_total,
        transcendentals=0,
        bytes_accessed=(B * N * (O + N * O + (N * D if emit_pairs else 0)) * out_isz
                        + B * N * (D + 1) * in_isz
                        + B * N * O * jp_isz
                        + (B * N * D * in_isz if emit_pairs else 0)
                        + (D + 1) * w_total * w_isz))

    outs = pl.pallas_call(
        _build_kernel(N, D, O, emit_pairs),
        out_shape=tuple(out_shape),
        grid_spec=pltpu.PrefetchScalarGridSpec(
            num_scalar_prefetch=0,
            grid=grid,
            in_specs=in_specs,
            out_specs=tuple(out_specs),
        ),
        compiler_params=pltpu.CompilerParams(
            # Each output block is written exactly once => both axes parallel,
            # so megacore chips can shard either the batch or row-tile axis.
            dimension_semantics=("parallel", "parallel"),
            vmem_limit_bytes=int(vmem_limit),
        ),
        cost_estimate=cost,
    )(*args)

    single = outs[0]
    pair_out = outs[1].reshape(B, N, N, O)        # free, layout-preserving
    if emit_pairs:
        pairs = outs[2].reshape(B, N, N, D)
    else:
        # Lane-sparse for this N*D: plain XLA broadcast subtract instead of
        # masked vst.msk on N^2 data.
        pairs = x[..., None, :, :] - x[..., :, None, :]
    return single, pair_out, pairs


def make_features_ref(x, ws, bs, wp, bp):
    """Pure-JAX reference mirroring the PyTorch forward."""
    pairs = x[..., None, :, :] - x[..., :, None, :]
    single = jnp.dot(x, ws) + bs[0]
    pair_out = jnp.dot(pairs, wp) + bp[0]
    return single, pair_out, pairs


# --------------------------------------------------------------------------
# Demo / self-test
# --------------------------------------------------------------------------
if __name__ == "__main__":
    def _run_and_check(B, N, D, O, atol_pairs):
        key = jax.random.PRNGKey(0)
        kx, kws, kbs, kwp, kbp = jax.random.split(key, 5)
        x = jax.random.normal(kx, (B, N, D), dtype=jnp.float32)
        ws = jax.random.normal(kws, (D, O), dtype=jnp.float32) * 0.1   # single.weight.T
        bs = jax.random.normal(kbs, (1, O), dtype=jnp.float32) * 0.1   # single.bias
        wp = jax.random.normal(kwp, (D, O), dtype=jnp.float32) * 0.1   # pair.weight.T
        bp = jax.random.normal(kbp, (1, O), dtype=jnp.float32) * 0.1   # pair.bias

        single, pair_out, pairs = jax.jit(make_features)(x, ws, bs, wp, bp)
        jax.block_until_ready((single, pair_out, pairs))

        r_single, r_pair_out, r_pairs = make_features_ref(x, ws, bs, wp, bp)
        assert jnp.allclose(single, r_single, atol=1e-5, rtol=1e-5)
        assert jnp.allclose(pair_out, r_pair_out, atol=1e-5, rtol=1e-5)
        assert jnp.allclose(pairs, r_pairs, atol=atol_pairs, rtol=1e-6)

    # Small shapes consistent with the module: in_dim=4, out_dim=32, seq=8, batch=2.
    # (N*D = 32 < 128 => pairs slab is produced by XLA, single/pair_out by the kernel.)
    _run_and_check(B=2, N=8, D=4, O=32, atol_pairs=1e-6)
    # Slightly larger seq so the full kernel path (pairs slab emitted lane-dense
    # from the kernel, N*D = 128) is also exercised.
    _run_and_check(B=2, N=32, D=4, O=32, atol_pairs=1e-6)

    print("KERNEL_OK")
</pallas_src>

<mosaic_0001>
module attributes {stable_mosaic.version = 11 : i64} {
  func.func @kernel_nopairs(%arg0: i32, %arg1: i32, %arg2: memref<1x8x5xf32, #tpu.memory_space<vmem>>, %arg3: memref<1x1x256xf32, #tpu.memory_space<vmem>>, %arg4: memref<5x288xf32, #tpu.memory_space<vmem>>, %arg5: memref<1x8x32xf32, #tpu.memory_space<vmem>>, %arg6: memref<1x8x256xf32, #tpu.memory_space<vmem>>) attributes {dimension_semantics = [#tpu.dimension_semantics<parallel>, #tpu.dimension_semantics<parallel>], iteration_bounds = array<i64: 2, 1>, scalar_prefetch = 0 : i64, scratch_operands = 0 : i64, tpu.core_type = #tpu.core_type<tc>, window_params = [{transform_indices = @transform_0, window_bounds = array<i64: 1, 8, 5>}, {transform_indices = @transform_1, window_bounds = array<i64: 1, 1, 256>}, {pipeline_mode = #tpu.pipeline_mode<synchronous>, transform_indices = @transform_2, window_bounds = array<i64: 5, 288>}, {transform_indices = @transform_3, window_bounds = array<i64: 1, 8, 32>}, {transform_indices = @transform_4, window_bounds = array<i64: 1, 8, 256>}]} {
    %c0 = arith.constant 0 : index
    %c0_0 = arith.constant 0 : index
    %c0_1 = arith.constant 0 : index
    %0 = vector.load %arg2[%c0, %c0_0, %c0_1] : memref<1x8x5xf32, #tpu.memory_space<vmem>>, vector<1x8x5xf32>
    %1 = vector.shape_cast %0 : vector<1x8x5xf32> to vector<8x5xf32>
    %c0_2 = arith.constant 0 : index
    %c0_3 = arith.constant 0 : index
    %2 = vector.load %arg4[%c0_2, %c0_3] : memref<5x288xf32, #tpu.memory_space<vmem>>, vector<5x288xf32>
    %cst = arith.constant dense<0.000000e+00> : vector<8x288xf32>
    %3 = tpu.matmul %1, %2, %cst {dimension_numbers = #tpu.dot_dimension_numbers<[1], [0], [0], [1], [0, 0, 1, 1], [], []>} : vector<8x5xf32>, vector<5x288xf32>, vector<8x288xf32> -> vector<8x288xf32>
    %4 = vector.extract_strided_slice %3 {offsets = [0, 0], sizes = [8, 256], strides = [1, 1]} : vector<8x288xf32> to vector<8x256xf32>
    %5 = vector.extract_strided_slice %3 {offsets = [0, 256], sizes = [8, 32], strides = [1, 1]} : vector<8x288xf32> to vector<8x32xf32>
    %c0_4 = arith.constant 0 : index
    %c0_5 = arith.constant 0 : index
    %c0_6 = arith.constant 0 : index
    %6 = vector.load %arg5[%c0_4, %c0_5, %c0_6] : memref<1x8x32xf32, #tpu.memory_space<vmem>>, vector<1x8x32xf32>
    %7 = vector.shape_cast %6 : vector<1x8x32xf32> to vector<8x32xf32>
    %8 = vector.shape_cast %5 : vector<8x32xf32> to vector<1x8x32xf32>
    tpu.vector_store %arg5[%c0_4, %c0_5, %c0_6], %8 {strides = array<i32>} : memref<1x8x32xf32, #tpu.memory_space<vmem>>, vector<1x8x32xf32>,
    %c0_7 = arith.constant 0 : index
    %c0_8 = arith.constant 0 : index
    %c0_9 = arith.constant 0 : index
    %9 = vector.load %arg3[%c0_7, %c0_8, %c0_9] : memref<1x1x256xf32, #tpu.memory_space<vmem>>, vector<1x1x256xf32>
    %10 = vector.shape_cast %9 : vector<1x1x256xf32> to vector<1x256xf32>
    %11 = vector.broadcast %10 : vector<1x256xf32> to vector<8x256xf32>
    %12 = arith.subf %11, %4 : vector<8x256xf32>
    %c0_10 = arith.constant 0 : index
    %c0_11 = arith.constant 0 : index
    %c0_12 = arith.constant 0 : index
    %13 = vector.load %arg6[%c0_10, %c0_11, %c0_12] : memref<1x8x256xf32, #tpu.memory_space<vmem>>, vector<1x8x256xf32>
    %14 = vector.shape_cast %13 : vector<1x8x256xf32> to vector<8x256xf32>
    %15 = vector.shape_cast %12 : vector<8x256xf32> to vector<1x8x256xf32>
    tpu.vector_store %arg6[%c0_10, %c0_11, %c0_12], %15 {strides = array<i32>} : memref<1x8x256xf32, #tpu.memory_space<vmem>>, vector<1x8x256xf32>,
    return
  }
  func.func @transform_0(%arg0: i32, %arg1: i32) -> (i32, i32, i32) {
    %c0_i32 = arith.constant 0 : i32
    %c0_i32_0 = arith.constant 0 : i32
    return %arg0, %arg1, %c0_i32 : i32, i32, i32
  }
  func.func @transform_1(%arg0: i32, %arg1: i32) -> (i32, i32, i32) {
    %c0_i32 = arith.constant 0 : i32
    %c0_i32_0 = arith.constant 0 : i32
    %c0_i32_1 = arith.constant 0 : i32
    return %arg0, %c0_i32, %c0_i32_0 : i32, i32, i32
  }
  func.func @transform_2(%arg0: i32, %arg1: i32) -> (i32, i32) {
    %c0_i32 = arith.constant 0 : i32
    %c0_i32_0 = arith.constant 0 : i32
    %c0_i32_1 = arith.constant 0 : i32
    return %c0_i32, %c0_i32_0 : i32, i32
  }
  func.func @transform_3(%arg0: i32, %arg1: i32) -> (i32, i32, i32) {
    %c0_i32 = arith.constant 0 : i32
    %c0_i32_0 = arith.constant 0 : i32
    return %arg0, %arg1, %c0_i32 : i32, i32, i32
  }
  func.func @transform_4(%arg0: i32, %arg1: i32) -> (i32, i32, i32) {
    %c0_i32 = arith.constant 0 : i32
    %c0_i32_0 = arith.constant 0 : i32
    return %arg0, %arg1, %c0_i32 : i32, i32, i32
  }
}

</mosaic_0001>

<bundles_post_ra>
// kernel: tile.9
= control target key start
LH: loop header
LB: loop body
LE: loop exit
PB: predicated region body
PF: predicated region fallthrough
CT: control target
= control target key end

     0   :  { %vm15_vm0 = vcmask 1047556   ;;  %s68_s16 = smov 96   ;;  %vm3_vm1 = vcmask 261120   ;;  %s70_s21 = smov 64   ;;  %vm19_vm2 = vcmask 1048320   ;;  %vm31_vm3 = vcmask 785920   ;;  %s108_s0 = inlined_call_operand.vmem [shape: f32[4,8,32], index: 0, kind: input, shape index: {}]   ;;  %s109_s1 = inlined_call_operand.vmem [shape: f32[4,256], index: 1, kind: output, shape index: {}]  }
   0x1   :  { %v58_v0 = vld [vmem:[%s108_s0 + $0x3] ss:$8 sm:$0xf]   ;;  %v59_v1 = vld [vmem:[%s108_s0 - $0x19] ss:$8 sm:$0xf0]  }
   0x2   :  { %v60_v2 = vld [vmem:[%s108_s0 + $0x2] ss:$8 sm:$0xf]   ;;  %v16_v3 = vsel %vm15_vm0, %v59_v1, %v58_v0  ;;  %v61_v4 = vld [vmem:[%s108_s0 - $0x1a] ss:$8 sm:$0xf0]  }
   0x3   :  { %v62_v5 = vld [vmem:[%s108_s0 + $0x1] ss:$8 sm:$0xf]   ;;  %17 = vrot.lane.b32.xlu0 %v16_v3, %s68_s16  ;;  %v63_v6 = vld [vmem:[%s108_s0 - $0x1b] ss:$8 sm:$0xf0]   ;;  %v28_v7 = vsel %vm15_vm0, %v61_v4, %v60_v2 }
   0x4   :  { %v40_v8 = vsel %vm15_vm0, %v63_v6, %v62_v5  ;;  %v2_v9 = vld [vmem:[%s108_s0] ss:$4 sm:$0xff]   ;;  %s69_s0 = smov 32   ;;  %vm43_vm4 = vcmask 523520  }
   0x5   :  { %41 = vrot.lane.b32.xlu1 %v40_v8, %s69_s0  ;;  %4 = vst.msk [vmem:[#allocation0] ss:$8 sm:$0x3] %vm3_vm1, %v2_v9   ;;  %6 = vst.msk [vmem:[#allocation0 - $0xf] ss:$8 sm:$0xc] %vm3_vm1, %v2_v9  }
   0x6   :  { %8 = vst.msk [vmem:[#allocation0 - $0x1e] ss:$8 sm:$0x30] %vm3_vm1, %v2_v9   ;;  %10 = vst.msk [vmem:[#allocation0 - $0x2d] ss:$8 sm:$0xc0] %vm3_vm1, %v2_v9  }
   0x7   :  { %29 = vrot.lane.b32.xlu0 %v28_v7, %s70_s21 }
  0x75   :  { %v18_v10 = vpop.permute.xlu0 %17  }
  0x76   :  { %20 = vst.msk [vmem:[#allocation0] sm:$0xf] %vm19_vm2, %v18_v10   ;;  %22 = vst.msk [vmem:[#allocation0 + $0x4] sm:$0xf0] %vm19_vm2, %v18_v10  }
  0x77   :  { %v42_v11 = vpop.permute.xlu1 %41  }
  0x79   :  { %v30_v12 = vpop.permute.xlu0 %29  }
  0x7a   :  { %32 = vst.msk [vmem:[#allocation0] sm:$0xf] %vm31_vm3, %v30_v12   ;;  %34 = vst.msk [vmem:[#allocation0 + $0x4] sm:$0xf0] %vm31_vm3, %v30_v12  }
  0x7b   :  { %44 = vst.msk [vmem:[#allocation0] sm:$0xf] %vm43_vm4, %v42_v11   ;;  %46 = vst.msk [vmem:[#allocation0 + $0x4] sm:$0xf0] %vm43_vm4, %v42_v11  }
  0x82   :  { %v50_v13 = vld [vmem:[#allocation0] sm:$0xf]  ;;  %v54_v14 = vld [vmem:[#allocation0 + $0x8] sm:$0xf] }
  0x83   :  { %52 = vst [vmem:[%s109_s1] sm:$0xf] %v50_v13  ;;  %64 = vst [vmem:[%s109_s1 + $0x4] sm:$0xf] %v54_v14 }

// kernel: make_features.1
= control target key start
LH: loop header
LB: loop body
LE: loop exit
PB: predicated region body
PF: predicated region fallthrough
CT: control target
= control target key end

     0   :  { %s1324_s0 = inlined_call_operand.hbm [shape: f32[2,8,5], index: 0, kind: input, shape index: {}]   ;;  %s1325_s1 = inlined_call_operand.hbm [shape: f32[2,1,256], index: 1, kind: input, shape index: {}]   ;;  %s1326_s2 = inlined_call_operand.hbm [shape: f32[5,288], index: 2, kind: input, shape index: {}]   ;;  %s1327_s3 = inlined_call_operand.hbm [shape: f32[2,8,32], index: 3, kind: output, shape index: {0}]   ;;  %s1328_s4 = inlined_call_operand.hbm [shape: f32[2,8,256], index: 4, kind: output, shape index: {1}]  }
   0x1   :  { %1333 = sst [smem:[#allocation16_spill]] %s1324_s0 }
   0x2   :  { %1334 = sst [smem:[#allocation17_spill]] %s1326_s2 }
   0x3   :  { %10 = vsyncpa [#allocation3], 0 }
   0x4   :  { %12 = vsyncpa [#allocation3 + $0x1], 0 }
   0x5   :  { %13 = vsyncpa [#allocation6], 0 }
   0x6   :  { %15 = vsyncpa [#allocation6 + $0x1], 0 }
   0x7   :  { %16 = vsyncpa [#allocation4], 0 }
   0x8   :  { %18 = vsyncpa [#allocation4 + $0x1], 0 }
   0x9   :  { %19 = vsyncpa [#allocation10], 0 }
   0xa   :  { %21 = vsyncpa [#allocation10 + $0x1], 0  ;;  %s1019_s15 = smov 0   ;;  %s1021_s16 = smov 0  }
   0xb   :  { %s1023_s17 = smov 0   ;;  %s1025_s18 = smov 0  }
   0xc   :  { %s1027_s19 = smov 0   ;;  %s1029_s20 = smov 0  }
   0xd LB: > { %s1050_s21 = sadd.s32 4294967295, %s985_s20   ;;  %s654_s22 = sadd.s32 4294967294, %s985_s20   ;;  %s985_s20 = sphi %s1029_s20, %s27_s20   ;;  %s981_s19 = sphi %s1027_s19, %s1360_s19   ;;  %s977_s18 = sphi %s1025_s18, %s1359_s18   ;;  %s973_s17 = sphi %s1023_s17, %s1358_s17   ;;  %s969_s16 = sphi %s1021_s16, %s1357_s16   ;;  %s965_s15 = sphi %s1019_s15, %s1356_s15  }
   0xe   : > { %s48_s23 = sadd.s32 1, %s973_s17  ;;  %p55_p0 = scmp.ne.s32.totalorder %s973_s17, %s969_s16 }
   0xf   : > { %p61_p1 = scmp.ne.s32.totalorder %s969_s16, %s965_s15  ;;  %p1329_p2 = scmp.eq.s32.totalorder %s1050_s21, 0 }
  0x10   : > { %p134_p3 = scmp.eq.s32.totalorder %s1050_s21, 1  ;;  %p140_p4 = scmp.eq.s32.totalorder %s654_s22, 1 }
  0x11   : > { %p1062_p5 = por %p1329_p2, %p61_p1  ;;  %p655_p6 = scmp.ge.s32.totalorder %s985_s20, 1 }
  0x12   : > { %p1070_p7 = por %p134_p3, %p55_p0  ;;  %p1074_p8 = por %p140_p4, %p61_p1 }
  0x13   : > { %s1335_s24 = scalar_select %p1062_p5, 1, 0 }
  0x14   : > { %s1336_s25 = scalar_select %p1070_p7, 1, 0 }
  0x15   : > { %s1337_s26 = scalar_select %p1074_p8, 1, 0 }
  0x16   : > { %p175_p9 = scmp.lt.s32.totalorder %s985_s20, 3  ;;  %s987_s28 = smov [#allocation7]  }
  0x17   : > { %s188_s29 = sshll.u32 %s987_s28, 4  ;;  %s39_s30 = sadd.s32 1, %s981_s19  ;;  %s189_s29 = int_to_ptr.vmem [resolvable:$true] %s188_s29 }
  0x18   : > { %p1080_p11 = pnand %p655_p6, %p175_p9  ;;  %p56_p13 = scmp.eq.s32.totalorder %s985_s20, 0 }
  0x19   : > { %p1094_p1 = scmp.ge.s32.totalorder %s39_s30, 2  ;;  %s1107_s8 = sand.u32 1, %s973_s17  }
  0x1a   : > { %s1338_s27 = scalar_select %p1080_p11, 1, 0 }
  0x1b   : > { %p702_p12 = pneg %p1080_p11  ;;  %p1101_p4 = por %p56_p13, %p55_p0 }
  0x1c   : > { %s1340_s6 = scalar_select %p1094_p1, 1, 0 }
  0x1d   : > { %p1090_p3 = pnand %p702_p12, %p1329_p2  ;;  %s1342_s2 = sld [smem:[#allocation17_spill]] }
  0x1e   : > { %s1341_s7 = scalar_select %p1101_p4, 1, 0 }
  0x1f   : > { %p777_p12 = pneg %p1090_p3 }
  0x23   : > { %s775_s11 = scalar_lea.hbm %s1342_s2, 384 }
  0x24   : > { %p776_p9 = scmp.ne.s32.totalorder %s1342_s2, %s775_s11  ;;  %p782_p0 = scmp.lt.u32.totalorder %s775_s11, %s1342_s2 }
  0x26   : > { %p778_p10 = pnand %p777_p12, %p776_p9 }
  0x28   : > { %p779_p2 = pneg %p778_p10 }
  0x2a   : > { %p784_p13 = pnand %p782_p0, %p779_p2 }
  0x2c   : > { %787 = shalt.err (!%p784_p13)
}
  0x2d   : > { %s788_s28 = scalar_lea.vmem %s189_s29, 384  ;;  %p796_p5 = scmp.lt.s32.totalorder %s189_s29, %s189_s29 }
  0x2e   : > { %p789_p6 = scmp.ne.s32.totalorder %s189_s29, %s788_s28  ;;  %p797_p11 = scmp.lt.s32.totalorder %s788_s28, %s788_s28 }
  0x30   : > { %p791_p8 = pnand %p789_p6, %p777_p12  ;;  %p798_p4 = por %p797_p11, %p796_p5 }
  0x32   : > { %p792_p7 = pneg %p791_p8 }
  0x34   : > { %p799_p1 = pnand %p798_p4, %p792_p7 }
  0x36   : > { %802 = shalt.err (!%p799_p1)
}
  0x37   : > { %705 = dma.hbm_to_vmem [thread:$0]  (!%p1090_p3), %s1342_s2, 384, %s189_s29, [#allocation6]  }
  0x38   : > { %p1343_p2 = scmp.ne.s32.totalorder %s1340_s6, 0  ;;  %s658_s5 = sshll.u32 %s1107_s8, 3 }
  0x39   : > { %s659_s12 = sshll.u32 %s981_s19, 7  ;;  %s1344_s0 = sld [smem:[#allocation16_spill]] }
  0x3a   : > { %s1362_s30 = smov (%p1343_p2, %s39_s30), 0  ;;  %s203_s28 = scalar_lea.vmem [#allocation2], %s658_s5 }
  0x3b   : > { %s43_s11 = ssub.s32 %s981_s19, %s1362_s30  ;;  %s211_s9 = sshll.u32 %s203_s28, 4  ;;  %s1143_s9 = int_to_ptr.vmem [resolvable:$true] %s211_s9 }
  0x3c   : > { %p46_p5 = scmp.eq.s32.totalorder %s43_s11, 0  ;;  %p1345_p7 = scmp.ne.s32.totalorder %s1341_s7, 0 }
  0x3d   : > { %p1346_p8 = scmp.lt.s32.totalorder %s985_s20, 2  ;;  %s660_s11 = sshll.u32 %s1107_s8, 1 }
  0x3e   : > { %s1141_s29 = scalar_select %p46_p5, %s973_s17, %s48_s23  }
  0x3f   : > { %s1136_s22 = scalar_lea.hbm %s1344_s0, %s659_s12  ;;  %p1149_p10 = pnand %p1346_p8, %p1345_p7 }
  0x40   : > { %s200_s12 = scalar_lea.sflag [#allocation3], %s1107_s8  ;;  %s803_s13 = scalar_lea.hbm %s1136_s22, 128 }
  0x41   : > { %p804_p11 = scmp.ne.s32.totalorder %s1136_s22, %s803_s13  ;;  %p805_p3 = pneg %p1149_p10 }
  0x42   : > { %s808_s5 = scalar_lea.hbm %s1344_s0, 256  ;;  %p809_p6 = scmp.lt.u32.totalorder %s1136_s22, %s1344_s0 }
  0x43   : > { %p806_p1 = pnand %p805_p3, %p804_p11  ;;  %p810_p9 = scmp.lt.u32.totalorder %s808_s5, %s803_s13 }
  0x44   : > { %p812_p0 = scmp.lt.u32.totalorder %s803_s13, %s1136_s22 }
  0x45   : > { %p807_p4 = pneg %p806_p1  ;;  %p811_p12 = por %p810_p9, %p809_p6 }
  0x47   : > { %p813_p13 = por %p812_p0, %p811_p12 }
  0x49   : > { %p814_p2 = pnand %p813_p13, %p807_p4 }
  0x4b   : > { %817 = shalt.err (!%p814_p2)
}
  0x4c   : > { %s818_s10 = scalar_lea.vmem %s1143_s9, 128  ;;  %s988_s23 = smov [#allocation2]  }
  0x4d   : > { %p819_p5 = scmp.ne.s32.totalorder %s1143_s9, %s818_s10  ;;  %s823_s7 = sshll.u32 %s988_s23, 4  ;;  %s824_s7 = int_to_ptr.vmem [resolvable:$false] %s823_s7 }
  0x4e   : > { %s825_s14 = scalar_lea.vmem %s824_s7, 256  ;;  %p826_p11 = scmp.lt.s32.totalorder %s1143_s9, %s824_s7 }
  0x4f   : > { %p821_p7 = pnand %p819_p5, %p805_p3  ;;  %p827_p1 = scmp.lt.s32.totalorder %s825_s14, %s818_s10 }
  0x51   : > { %p822_p8 = pneg %p821_p7  ;;  %p828_p6 = por %p827_p1, %p826_p11 }
  0x53   : > { %p829_p9 = pnand %p828_p6, %p822_p8 }
  0x55   : > { %832 = shalt.err (!%p829_p9)
}
  0x56   : > { %709 = dma.hbm_to_vmem [thread:$0]  (!%p1149_p10), %s1136_s22, 128, %s1143_s9, %s200_s12  }
  0x57   : > { %s681_s13 = sshll.u32 %s981_s19, 5  ;;  %s222_s10 = scalar_lea.vmem [#allocation5], %s660_s11 }
  0x58   : > { %s1185_s23 = scalar_lea.hbm %s1325_s1, %s681_s13  ;;  %s230_s7 = sshll.u32 %s222_s10, 4  ;;  %s231_s7 = int_to_ptr.vmem [resolvable:$true] %s230_s7 }
  0x59   : > { %s1348_s14 = sand.u32 1, %s985_s20   ;;  %s833_s2 = scalar_lea.hbm %s1185_s23, 32 }
  0x5a   : > { %s219_s0 = scalar_lea.sflag [#allocation6], %s1348_s14  ;;  %p834_p4 = scmp.ne.s32.totalorder %s1185_s23, %s833_s2 }
  0x5b   : > { %s838_s12 = scalar_lea.hbm %s1325_s1, 64  ;;  %p839_p13 = scmp.lt.u32.totalorder %s1185_s23, %s1325_s1 }
  0x5c   : > { %p836_p12 = pnand %p834_p4, %p805_p3  ;;  %p840_p2 = scmp.lt.u32.totalorder %s838_s12, %s833_s2 }
  0x5d   : > { %p842_p7 = scmp.lt.u32.totalorder %s833_s2, %s1185_s23 }
  0x5e   : > { %p837_p0 = pneg %p836_p12  ;;  %p841_p5 = por %p840_p2, %p839_p13 }
  0x60   : > { %p843_p8 = por %p842_p7, %p841_p5 }
  0x62   : > { %p844_p11 = pnand %p843_p8, %p837_p0 }
  0x64   : > { %847 = shalt.err (!%p844_p11)
}
  0x65   : > { %s848_s11 = scalar_lea.vmem %s231_s7, 32  ;;  %s989_s5 = smov [#allocation5]  }
  0x66   : > { %p849_p1 = scmp.ne.s32.totalorder %s231_s7, %s848_s11  ;;  %s853_s28 = sshll.u32 %s989_s5, 4  ;;  %s854_s28 = int_to_ptr.vmem [resolvable:$false] %s853_s28 }
  0x67   : > { %s855_s10 = scalar_lea.vmem %s854_s28, 64  ;;  %p856_p4 = scmp.lt.s32.totalorder %s231_s7, %s854_s28 }
  0x68   : > { %p851_p6 = pnand %p849_p1, %p805_p3  ;;  %p857_p12 = scmp.lt.s32.totalorder %s855_s10, %s848_s11 }
  0x6a   : > { %p852_p9 = pneg %p851_p6  ;;  %p858_p2 = por %p857_p12, %p856_p4 }
  0x6c   : > { %p859_p13 = pnand %p858_p2, %p852_p9 }
  0x6e   : > { %862 = shalt.err (!%p859_p13)
}
  0x6f   : > { %712 = dma.hbm_to_vmem [thread:$0]  (!%p1149_p10), %s1185_s23, 32, %s231_s7, %s219_s0  }
  0x70   : > { %p1349_p0 = scmp.ne.s32.totalorder %s1338_s27, 0 }
  0x71   : > { %s1213_s2 = sand.u32 (!%p1349_p0), 1, %s969_s16   ;;  %p1350_p3 = scmp.ne.s32.totalorder (!%p1349_p0), %s1335_s24, 0 }
  0x72   : > { %239 = sbr.rel (%p1349_p0) target bundleno = 382 (0x17e), region = 32  ;;  %s664_s14 = sshll.u32 (!%p1349_p0), %s1213_s2, 3 }
  0x73   : > { %s242_s22 = scalar_lea.sflag (!%p1349_p0), [#allocation3], %s1213_s2  ;;  %s245_s9 = scalar_lea.vmem (!%p1349_p0), [#allocation2], %s664_s14 }
  0x79   : > { %944 = dma.done.wait (%p1350_p3), %s242_s22, 128  }
  0x7a   : > { %946 = vsyncadd (%p1350_p3), %s242_s22, 4294967168  ;;  %s250_s0 = sand.u32 1, %s1050_s21   ;;  %s665_s27 = sshll.u32 %s1213_s2, 1 }
  0x7b   : > { %s251_s6 = scalar_lea.sflag [#allocation6], %s250_s0  ;;  %s254_s23 = scalar_lea.vmem [#allocation5], %s665_s27 }
  0x7c   : > { %948 = dma.done.wait (%p1350_p3), %s251_s6, 32  }
  0x7d   : > { %950 = vsyncadd (%p1350_p3), %s251_s6, 4294967264  ;;  %p1351_p10 = scmp.eq.s32.totalorder %s1050_s21, 0 }
  0x7f   : > { %952 = dma.done.wait (%p1351_p10), [#allocation6], 384   ;;  %p1352_p5 = pmov %p1351_p10 }
  0x80   : > { %v990_v0 = vmov 0.0   ;;  %vm991_vm0 = vmmov 0   ;;  %vm301_vm1 = vcmask 1044480   ;;  %v295_v1 = vld [vmem:[#allocation7 + $0x8] sm:$0x1f]  ;;  %vm297_vm2 = vcmask 39936  }
  0x81   : > { %954 = vsyncadd (%p1352_p5), [#allocation6], 4294966912  ;;  %375 = vmatprep.mubr.f32.mxu0 %v990_v0  ;;  %685 = vmatprep.subr.mxu1 %v990_v0  ;;  %v294_v2 = vld [vmem:[#allocation7] sm:$0x1f]  ;;  %v293_v3 = vld [vmem:[%s245_s9] sm:$0xff]  ;;  %v456_v5 = vlaneseq  ;;  %s668_s21 = sshll.u32 %s1213_s2, 4 }
  0x82   : > { %687 = vmatprep.mubr.msk.f32.mxu1 %vm991_vm0, %v990_v0  ;;  %669 = vmatprep.subr.msk.mxu0 %vm301_vm1, %v295_v1  ;;  %v296_v4 = vld [vmem:[#allocation7 + $0x10] sm:$0x1f]  ;;  %v454_v8 = vld [vmem:[%s254_s23] sm:$0x3]  ;;  %s676_s24 = sshll.u32 %s977_s18, 7  ;;  %s285_s7 = scalar_lea.vmem [#allocation8], %s664_s14 }
  0x83   : > { %670 = vmatpush1.msk.msra.mxu0 %vm301_vm1, %v294_v2  ;;  %686 = vmatpush3.msk.msra.mxu1 %vm301_vm1, %v296_v4  ;;  %v457_v6 = vshrl.u32 %v456_v5, 7  ;;  %s490_s12 = sshll.u32 %s285_s7, 4  ;;  %vm452_vm3 = vcmask 261120   ;;  %s682_s8 = sshll.u32 %s977_s18, 8  ;;  %s1246_s12 = int_to_ptr.vmem [resolvable:$true] %s490_s12 }
  0x84   : > { %671 = vmatmul.mubr.msk.f32.vlgmr.msra.gmra.mrb[0].mxu0 %vm297_vm2, %v293_v3  ;;  %688 = vmatmul.mubr.msk.f32.vlgmr.msra.gmra.mrb[0].mxu1 %vm297_vm2, %v293_v3  ;;  %s1238_s13 = scalar_lea.vmem [#allocation9], %s668_s21  ;;  %s1244_s10 = scalar_lea.hbm %s1327_s3, %s676_s24 }
  0x85   : > { %v458_v7 = vsub.s32 0, %v457_v6  ;;  %v462_v9 = vsub.s32 1, %v457_v6  ;;  %s506_s11 = sshll.u32 %s1238_s13, 4  ;;  %s1251_s22 = scalar_lea.hbm %s1328_s4, %s682_s8  ;;  %s1253_s11 = int_to_ptr.vmem [resolvable:$true] %s506_s11 }
  0x86   : > { %s471_s9 = scalar_lea.sflag [#allocation4], %s1213_s2  ;;  %s863_s0 = scalar_lea.vmem %s1246_s12, 128 }
  0x87   : > { %v459_v10 = vrot.slane %v454_v8, %v458_v7  ;;  %v463_v11 = vrot.slane %v454_v8, %v462_v9  ;;  %p864_p7 = scmp.ne.s32.totalorder %s1246_s12, %s863_s0  ;;  %p1353_p8 = scmp.ne.s32.totalorder %s1336_s25, 0 }
  0x88   : > { %s992_s27 = smov [#allocation8]  }
  0x89   : > { %p865_p11 = pnand %p864_p7, %p1353_p8  ;;  %s867_s6 = sshll.u32 %s992_s27, 4  ;;  %s868_s6 = int_to_ptr.vmem [resolvable:$false] %s867_s6 }
  0x8a   : > { %s869_s23 = scalar_lea.vmem %s868_s6, 256  ;;  %p870_p6 = scmp.lt.s32.totalorder %s1246_s12, %s868_s6 }
  0x8b   : > { %p866_p1 = pneg %p865_p11  ;;  %p871_p9 = scmp.lt.s32.totalorder %s869_s23, %s863_s0 }
  0x8d   : > { %p872_p4 = por %p871_p9, %p870_p6 }
  0x8f   : > { %p873_p12 = pnand %p872_p4, %p866_p1 }
 0x157   : > { %v377_v12 = vpop.f32.mrb[0].mxu0  ;;  %v448_v13 = vpop.f32.mrb[0].mxu1 }
 0x158   : > { %v466_v14 = vsub.f32 %v459_v10, %v377_v12  ;;  %v379_v15 = vpop.f32.mrb[1].mxu0  ;;  %453 = vst.msk [vmem:[%s285_s7] sm:$0xff] %vm452_vm3, %v448_v13  ;;  %v689_v16 = vpop.f32.mrb[1].mxu1 }
 0x159   : > { %v467_v17 = vsub.f32 %v463_v11, %v379_v15 }
 0x15a   : > { %876 = shalt.err (!%p873_p12)
}
 0x15b   : > { %s877_s21 = scalar_lea.hbm %s1244_s10, 128  ;;  %s881_s8 = scalar_lea.hbm %s1327_s3, 256 }
 0x15c   : > { %p878_p2 = scmp.ne.s32.totalorder %s1244_s10, %s877_s21  ;;  %p882_p3 = scmp.lt.u32.totalorder %s1244_s10, %s1327_s3 }
 0x15d   : > { %p883_p10 = scmp.lt.u32.totalorder %s881_s8, %s877_s21  ;;  %p885_p7 = scmp.lt.u32.totalorder %s877_s21, %s1244_s10 }
 0x15e   : > { %p879_p13 = pnand %p878_p2, %p1353_p8 }
 0x15f   : > { %p884_p5 = por %p883_p10, %p882_p3 }
 0x160   : > { %p880_p0 = pneg %p879_p13 }
 0x161   : > { %p886_p11 = por %p885_p7, %p884_p5 }
 0x163   : > { %p887_p1 = pnand %p886_p11, %p880_p0 }
 0x165   : > { %890 = shalt.err (!%p887_p1)
}
 0x166   : > { %698 = dma.vmem_to_hbm [thread:$0]  (%p1353_p8), %s1246_s12, 128, %s1244_s10, %s471_s9   ;;  %468 = vst [vmem:[%s1238_s13] sm:$0xff] %v466_v14  ;;  %469 = vst [vmem:[%s1238_s13 + $0x8] sm:$0xff] %v467_v17 }
 0x167   : > { %s476_s18 = scalar_lea.sflag [#allocation10], %s1213_s2  ;;  %s891_s14 = scalar_lea.vmem %s1253_s11, 256 }
 0x168   : > { %p892_p6 = scmp.ne.s32.totalorder %s1253_s11, %s891_s14  ;;  %s993_s0 = smov [#allocation9]  }
 0x169   : > { %s895_s27 = sshll.u32 %s993_s0, 4  ;;  %s896_s27 = int_to_ptr.vmem [resolvable:$false] %s895_s27 }
 0x16a   : > { %p893_p9 = pnand %p892_p6, %p1353_p8  ;;  %s897_s6 = scalar_lea.vmem %s896_s27, 512 }
 0x16b   : > { %p898_p12 = scmp.lt.s32.totalorder %s1253_s11, %s896_s27  ;;  %p899_p2 = scmp.lt.s32.totalorder %s897_s6, %s891_s14 }
 0x16c   : > { %p894_p4 = pneg %p893_p9 }
 0x16d   : > { %p900_p13 = por %p899_p2, %p898_p12 }
 0x16f   : > { %p901_p0 = pnand %p900_p13, %p894_p4 }
 0x171   : > { %904 = shalt.err (!%p901_p0)
}
 0x172   : > { %s905_s2 = scalar_lea.hbm %s1251_s22, 256  ;;  %s909_s10 = scalar_lea.hbm %s1328_s4, 512 }
 0x173   : > { %p906_p3 = scmp.ne.s32.totalorder %s1251_s22, %s905_s2  ;;  %p910_p7 = scmp.lt.u32.totalorder %s1251_s22, %s1328_s4 }
 0x174   : > { %p911_p11 = scmp.lt.u32.totalorder %s909_s10, %s905_s2  ;;  %p913_p6 = scmp.lt.u32.totalorder %s905_s2, %s1251_s22 }
 0x175   : > { %p907_p10 = pnand %p906_p3, %p1353_p8 }
 0x176   : > { %p912_p1 = por %p911_p11, %p910_p7 }
 0x177   : > { %p908_p5 = pneg %p907_p10 }
 0x178   : > { %p914_p9 = por %p913_p6, %p912_p1 }
 0x17a   : > { %p915_p4 = pnand %p914_p9, %p908_p5 }
 0x17c   : > { %918 = shalt.err (!%p915_p4)
}
 0x17d   : > { %699 = dma.vmem_to_hbm [thread:$0]  (%p1353_p8), %s1253_s11, 256, %s1251_s22, %s476_s18  }
 0x17e PF: > { %s518_s21 = sand.u32 1, %s965_s15   ;;  %p1354_p12 = scmp.ne.s32.totalorder %s1337_s26, 0 }
 0x17f   : > { %p1355_p2 = scmp.ge.s32.totalorder %s985_s20, 2  ;;  %s519_s24 = scalar_lea.sflag [#allocation4], %s518_s21 }
 0x181   : > { %p714_p13 = pnand %p1355_p2, %p1354_p12 }
 0x183   : > { %956 = dma.done.wait (!%p714_p13), %s519_s24, 128  }
 0x184   : > { %958 = vsyncadd (!%p714_p13), %s519_s24, 4294967168  ;;  %s528_s7 = scalar_lea.sflag [#allocation10], %s518_s21 }
 0x185   : > { %960 = dma.done.wait (!%p714_p13), %s528_s7, 256  }
 0x186   : > { %962 = vsyncadd (!%p714_p13), %s528_s7, 4294967040  ;;  %s27_s20 = sadd.s32 1, %s985_s20   ;;  %s1356_s15 = smov %s969_s16 }
 0x187   : > { %p24_p0 = scmp.ge.s32.totalorder %s27_s20, 4   ;;  %s1357_s16 = smov %s973_s17 }
 0x188   : > { %s1358_s17 = smov %s1141_s29  ;;  %s1359_s18 = smov %s981_s19 }
 0x189   : > { %s1360_s19 = smov %s1362_s30  ;;  %26 = sbr.rel (!%p24_p0) target bundleno = 13 (0xd), region = 111 }
 0x190   :  { %533 = vsyncpa [#allocation3], 1 }
 0x191   :  { %535 = vsyncpa [#allocation3 + $0x1], 1 }
 0x192   :  { %536 = vsyncpa [#allocation6], 1 }
 0x193   :  { %538 = vsyncpa [#allocation6 + $0x1], 1 }
 0x194   :  { %539 = vsyncpa [#allocation4], 1 }
 0x195   :  { %541 = vsyncpa [#allocation4 + $0x1], 1 }
 0x196   :  { %542 = vsyncpa [#allocation10], 1 }
 0x197   :  { %544 = vsyncpa [#allocation10 + $0x1], 1 }

</bundles_post_ra>
